<compile_context>
chip_gen: v6e
topology: v6e:2x2x1
jax: 0.10.0
libtpu: 0.0.40
codegen_flags: <defaults>
</compile_context>

<pallas_src>
import math

import jax
import jax.numpy as jnp
from jax.experimental import pallas as pl
from jax.experimental.pallas import tpu as pltpu

LANES = 128   # TPU lane width; packed weight matrices / output slab are 128 wide.
VP_OFF = 64   # lane offset where value|policy are packed inside the output slab.


def _round_up(x, m):
    return (x + m - 1) // m * m


def _cdiv(a, b):
    return -(-a // b)


def _num_tensorcores():
    """Best-effort TensorCore count per chip (megacore chips get 2)."""
    try:
        kind = jax.devices()[0].device_kind.lower()
    except Exception:  # pragma: no cover - defensive
        return 1
    if "lite" in kind or "v5e" in kind or "v6e" in kind or "v6 lite" in kind:
        return 1
    if "v4" in kind or "v5p" in kind or "v7" in kind:
        return 2
    return 1


# ----------------------------------------------------------------------------
# Kernel
# ----------------------------------------------------------------------------
def _recurrent_model_kernel(x_ref, w1a_ref, b1a_ref, w2a_ref, b2a_ref,
                            w1b_ref, b1b_ref, w2b_ref, b2b_ref, out_ref):
    """Fused RecurrentModel forward on one batch tile.

    Stage A (input = state_with_action x):
      h1    = relu(x @ W1a + b1a)      # fused dynamic/reward first layers
      out_a = h1 @ W2a + b2a           # lanes [0:E)  = hidden, lane [E] = reward,
                                       # lanes [E+1:) = exact zeros
    Stage B (input = out_a; W1b has zero rows >= E so only hidden lanes feed it):
      h2    = relu(out_a @ W1b + b1b)  # fused value/policy first layers
      out_b = h2 @ W2b + b2b           # lane [VP_OFF] = value,
                                       # lanes [VP_OFF+1 : VP_OFF+1+A) = policy,
                                       # all other lanes = exact zeros
    The two partial slabs occupy disjoint lanes -> one add + one full 128-lane
    unmasked store.
    """
    x = x_ref[...]

    h1 = jnp.dot(x, w1a_ref[...], preferred_element_type=jnp.float32)
    h1 = jnp.maximum(h1 + b1a_ref[...], 0.0)
    out_a = jnp.dot(h1, w2a_ref[...], preferred_element_type=jnp.float32)
    out_a = out_a + b2a_ref[...]

    h2 = jnp.dot(out_a, w1b_ref[...], preferred_element_type=jnp.float32)
    h2 = jnp.maximum(h2 + b1b_ref[...], 0.0)
    out_b = jnp.dot(h2, w2b_ref[...], preferred_element_type=jnp.float32)
    out_b = out_b + b2b_ref[...]

    out_ref[...] = (out_a + out_b).astype(out_ref.dtype)


# ----------------------------------------------------------------------------
# Wrapper
# ----------------------------------------------------------------------------
def recurrent_model_forward(x, packed, *, embedding_size, action_size,
                            max_block_b=1024, num_tensorcores=None):
    """x: (B, D_in) f32 -> (hidden (B,E), reward (B,1), value (B,1), policy (B,A))."""
    B, D_in = x.shape
    assert packed["w1a"].shape[0] == D_in

    if num_tensorcores is None:
        num_tensorcores = _num_tensorcores()

    # Tile selection: as few grid steps as possible, but keep >= num_tensorcores
    # steps so megacore chips can split the batch; tm divides B_pad by design.
    B8 = _round_up(max(B, 8), 8)
    steps = max(num_tensorcores, _cdiv(B8, max_block_b))
    tm = _round_up(_cdiv(B8, steps), 8)
    steps = _cdiv(B8, tm)
    B_pad = steps * tm
    if B_pad != B:
        # TODO(synk): in production pick B (or tm) so this pad copy never fires.
        x = jnp.pad(x, ((0, B_pad - B), (0, 0)))
    grid = (steps,)

    def rep(shape):  # replicated (weight/bias) spec, constant across the grid
        return pl.BlockSpec(shape, lambda i: (0, 0))

    # Advisory cost hint: 4 matmuls per row, no transcendentals.
    flops = 2 * B_pad * (D_in * LANES + 3 * LANES * LANES)
    bytes_accessed = 4 * (B_pad * D_in                        # x
                          + D_in * LANES + 3 * LANES * LANES  # weights
                          + 4 * LANES                         # biases
                          + B_pad * LANES)                    # single output slab

    out = pl.pallas_call(
        _recurrent_model_kernel,
        grid=grid,
        in_specs=[
            pl.BlockSpec((tm, D_in), lambda i: (i, 0)),   # x tile over batch
            rep((D_in, LANES)),                           # W1a
            rep((1, LANES)),                              # b1a
            rep((LANES, LANES)),                          # W2a
            rep((1, LANES)),                              # b2a
            rep((LANES, LANES)),                          # W1b
            rep((1, LANES)),                              # b1b
            rep((LANES, LANES)),                          # W2b
            rep((1, LANES)),                              # b2b
        ],
        out_specs=pl.BlockSpec((tm, LANES), lambda i: (i, 0)),
        out_shape=jax.ShapeDtypeStruct((B_pad, LANES), jnp.float32),
        compiler_params=pltpu.CompilerParams(
            dimension_semantics=("parallel",)),
        cost_estimate=pl.CostEstimate(flops=flops, transcendentals=0,
                                      bytes_accessed=bytes_accessed),
    )(x, packed["w1a"], packed["b1a"], packed["w2a"], packed["b2a"],
      packed["w1b"], packed["b1b"], packed["w2b"], packed["b2b"])

    E, A = embedding_size, action_size
    hidden = out[:B, :E]
    reward = out[:B, E:E + 1]
    value = out[:B, VP_OFF:VP_OFF + 1]
    policy_logits = out[:B, VP_OFF + 1:VP_OFF + 1 + A]
    return hidden, reward, value, policy_logits


# ----------------------------------------------------------------------------
# Parameter init (PyTorch nn.Linear default: U(-1/sqrt(fan_in), 1/sqrt(fan_in)),
# weights stored as (in, out) so the kernel computes x @ W + b) and packing.
# ----------------------------------------------------------------------------
def _init_linear(key, fan_in, fan_out):
    kw, kb = jax.random.split(key)
    bound = 1.0 / math.sqrt(fan_in)
    w = jax.random.uniform(kw, (fan_in, fan_out), jnp.float32, -bound, bound)
    b = jax.random.uniform(kb, (fan_out,), jnp.float32, -bound, bound)
    return w, b


def init_recurrent_params(key, state_with_action_size, hidden_neurons,
                          embedding_size, action_size):
    ks = jax.random.split(key, 8)
    wd1, bd1 = _init_linear(ks[0], state_with_action_size, hidden_neurons)
    wd2, bd2 = _init_linear(ks[1], hidden_neurons, embedding_size)
    wr1, br1 = _init_linear(ks[2], state_with_action_size, hidden_neurons)
    wr2, br2 = _init_linear(ks[3], hidden_neurons, 1)
    wv1, bv1 = _init_linear(ks[4], embedding_size, hidden_neurons)
    wv2, bv2 = _init_linear(ks[5], hidden_neurons, 1)
    wp1, bp1 = _init_linear(ks[6], embedding_size, hidden_neurons)
    wp2, bp2 = _init_linear(ks[7], hidden_neurons, action_size)
    return dict(wd1=wd1, bd1=bd1, wd2=wd2, bd2=bd2,
                wr1=wr1, br1=br1, wr2=wr2, br2=br2,
                wv1=wv1, bv1=bv1, wv2=wv2, bv2=bv2,
                wp1=wp1, bp1=bp1, wp2=wp2, bp2=bp2)


def pack_recurrent_params(p, *, state_with_action_size, hidden_neurons,
                          embedding_size, action_size):
    """Pack the 4 sub-MLPs into 128-lane fused block matrices (done once).

    Stage A outputs land in lanes [0:E) (hidden) and [E] (reward).
    Stage B outputs land in lanes [VP_OFF] (value) and [VP_OFF+1:VP_OFF+1+A)
    (policy) so the kernel can merge both stages into a single output slab.
    """
    D, H, E, A = state_with_action_size, hidden_neurons, embedding_size, action_size
    assert 2 * H <= LANES
    assert E + 1 <= VP_OFF                      # stage-A lanes below VP_OFF
    assert VP_OFF + 1 + A <= LANES              # stage-B lanes fit above VP_OFF

    w1a = jnp.zeros((D, LANES), jnp.float32)
    w1a = w1a.at[:, 0:H].set(p["wd1"]).at[:, H:2 * H].set(p["wr1"])
    b1a = jnp.zeros((1, LANES), jnp.float32)
    b1a = b1a.at[0, 0:H].set(p["bd1"]).at[0, H:2 * H].set(p["br1"])

    w2a = jnp.zeros((LANES, LANES), jnp.float32)
    w2a = w2a.at[0:H, 0:E].set(p["wd2"]).at[H:2 * H, E:E + 1].set(p["wr2"])
    b2a = jnp.zeros((1, LANES), jnp.float32)
    b2a = b2a.at[0, 0:E].set(p["bd2"]).at[0, E:E + 1].set(p["br2"])

    # Rows >= E are zero: the reward lane / padding lanes of out_a are ignored.
    w1b = jnp.zeros((LANES, LANES), jnp.float32)
    w1b = w1b.at[0:E, 0:H].set(p["wv1"]).at[0:E, H:2 * H].set(p["wp1"])
    b1b = jnp.zeros((1, LANES), jnp.float32)
    b1b = b1b.at[0, 0:H].set(p["bv1"]).at[0, H:2 * H].set(p["bp1"])

    # Value/policy write into the upper lane block [VP_OFF : VP_OFF+1+A).
    w2b = jnp.zeros((LANES, LANES), jnp.float32)
    w2b = w2b.at[0:H, VP_OFF:VP_OFF + 1].set(p["wv2"])
    w2b = w2b.at[H:2 * H, VP_OFF + 1:VP_OFF + 1 + A].set(p["wp2"])
    b2b = jnp.zeros((1, LANES), jnp.float32)
    b2b = b2b.at[0, VP_OFF:VP_OFF + 1].set(p["bv2"])
    b2b = b2b.at[0, VP_OFF + 1:VP_OFF + 1 + A].set(p["bp2"])

    return dict(w1a=w1a, b1a=b1a, w2a=w2a, b2a=b2a,
                w1b=w1b, b1b=b1b, w2b=w2b, b2b=b2b)


def reference_forward(x, p):
    """Plain-JAX reference: exactly the RecurrentModel composition."""
    hd = jnp.maximum(x @ p["wd1"] + p["bd1"], 0.0)
    hidden = hd @ p["wd2"] + p["bd2"]
    hr = jnp.maximum(x @ p["wr1"] + p["br1"], 0.0)
    reward = hr @ p["wr2"] + p["br2"]
    hv = jnp.maximum(hidden @ p["wv1"] + p["bv1"], 0.0)
    value = hv @ p["wv2"] + p["bv2"]
    hp = jnp.maximum(hidden @ p["wp1"] + p["bp1"], 0.0)
    policy = hp @ p["wp2"] + p["bp2"]
    return hidden, reward, value, policy


# ----------------------------------------------------------------------------
if __name__ == "__main__":
    # CartPole MuZero sizes: embedding 32, 2 actions, hidden 32.
    # state_with_action = [hidden_representation | action one-hot] -> D_in = 34.
    embedding_size = 32
    action_size = 2
    hidden_neurons = 32
    state_with_action_size = embedding_size + action_size  # 34
    batch = 256  # a batch of MCTS simulations

    key = jax.random.PRNGKey(0)
    kx, kp = jax.random.split(key)
    x = jax.random.normal(kx, (batch, state_with_action_size), jnp.float32)

    raw = init_recurrent_params(kp, state_with_action_size, hidden_neurons,
                                embedding_size, action_size)
    packed = pack_recurrent_params(raw,
                                   state_with_action_size=state_with_action_size,
                                   hidden_neurons=hidden_neurons,
                                   embedding_size=embedding_size,
                                   action_size=action_size)

    hidden, reward, value, policy = recurrent_model_forward(
        x, packed, embedding_size=embedding_size, action_size=action_size)
    (hidden, reward, value, policy) = jax.block_until_ready(
        (hidden, reward, value, policy))

    ref_hidden, ref_reward, ref_value, ref_policy = reference_forward(x, raw)

    assert hidden.shape == (batch, embedding_size)
    assert reward.shape == (batch, 1)
    assert value.shape == (batch, 1)
    assert policy.shape == (batch, action_size)
    assert jnp.allclose(hidden, ref_hidden, atol=1e-4, rtol=1e-4)
    assert jnp.allclose(reward, ref_reward, atol=1e-4, rtol=1e-4)
    assert jnp.allclose(value, ref_value, atol=1e-4, rtol=1e-4)
    assert jnp.allclose(policy, ref_policy, atol=1e-4, rtol=1e-4)

    print("KERNEL_OK")
</pallas_src>

<mosaic_0001>
module attributes {stable_mosaic.version = 11 : i64} {
  func.func @_recurrent_model_kernel(%arg0: i32, %arg1: memref<256x34xf32, #tpu.memory_space<vmem>>, %arg2: memref<34x128xf32, #tpu.memory_space<vmem>>, %arg3: memref<1x128xf32, #tpu.memory_space<vmem>>, %arg4: memref<128x128xf32, #tpu.memory_space<vmem>>, %arg5: memref<1x128xf32, #tpu.memory_space<vmem>>, %arg6: memref<128x128xf32, #tpu.memory_space<vmem>>, %arg7: memref<1x128xf32, #tpu.memory_space<vmem>>, %arg8: memref<128x128xf32, #tpu.memory_space<vmem>>, %arg9: memref<1x128xf32, #tpu.memory_space<vmem>>, %arg10: memref<256x128xf32, #tpu.memory_space<vmem>>) attributes {dimension_semantics = [#tpu.dimension_semantics<parallel>], iteration_bounds = array<i64: 1>, scalar_prefetch = 0 : i64, scratch_operands = 0 : i64, tpu.core_type = #tpu.core_type<tc>, window_params = [{transform_indices = @transform_0, window_bounds = array<i64: 256, 34>}, {pipeline_mode = #tpu.pipeline_mode<synchronous>, transform_indices = @transform_1, window_bounds = array<i64: 34, 128>}, {pipeline_mode = #tpu.pipeline_mode<synchronous>, transform_indices = @transform_2, window_bounds = array<i64: 1, 128>}, {pipeline_mode = #tpu.pipeline_mode<synchronous>, transform_indices = @transform_3, window_bounds = array<i64: 128, 128>}, {pipeline_mode = #tpu.pipeline_mode<synchronous>, transform_indices = @transform_4, window_bounds = array<i64: 1, 128>}, {pipeline_mode = #tpu.pipeline_mode<synchronous>, transform_indices = @transform_5, window_bounds = array<i64: 128, 128>}, {pipeline_mode = #tpu.pipeline_mode<synchronous>, transform_indices = @transform_6, window_bounds = array<i64: 1, 128>}, {pipeline_mode = #tpu.pipeline_mode<synchronous>, transform_indices = @transform_7, window_bounds = array<i64: 128, 128>}, {pipeline_mode = #tpu.pipeline_mode<synchronous>, transform_indices = @transform_8, window_bounds = array<i64: 1, 128>}, {transform_indices = @transform_9, window_bounds = array<i64: 256, 128>}]} {
    %c0 = arith.constant 0 : index
    %c0_0 = arith.constant 0 : index
    %0 = vector.load %arg1[%c0, %c0_0] : memref<256x34xf32, #tpu.memory_space<vmem>>, vector<256x34xf32>
    %c0_1 = arith.constant 0 : index
    %c0_2 = arith.constant 0 : index
    %1 = vector.load %arg2[%c0_1, %c0_2] : memref<34x128xf32, #tpu.memory_space<vmem>>, vector<34x128xf32>
    %cst = arith.constant dense<0.000000e+00> : vector<256x128xf32>
    %2 = tpu.matmul %0, %1, %cst {dimension_numbers = #tpu.dot_dimension_numbers<[1], [0], [0], [1], [0, 0, 1, 1], [], []>} : vector<256x34xf32>, vector<34x128xf32>, vector<256x128xf32> -> vector<256x128xf32>
    %c0_3 = arith.constant 0 : index
    %c0_4 = arith.constant 0 : index
    %3 = vector.load %arg3[%c0_3, %c0_4] : memref<1x128xf32, #tpu.memory_space<vmem>>, vector<1x128xf32>
    %4 = vector.broadcast %3 : vector<1x128xf32> to vector<256x128xf32>
    %5 = arith.addf %2, %4 : vector<256x128xf32>
    %cst_5 = arith.constant 0.000000e+00 : f32
    %6 = vector.broadcast %cst_5 : f32 to vector<256x128xf32>
    %7 = arith.maximumf %5, %6 : vector<256x128xf32>
    %c0_6 = arith.constant 0 : index
    %c0_7 = arith.constant 0 : index
    %8 = vector.load %arg4[%c0_6, %c0_7] : memref<128x128xf32, #tpu.memory_space<vmem>>, vector<128x128xf32>
    %cst_8 = arith.constant dense<0.000000e+00> : vector<256x128xf32>
    %9 = tpu.matmul %7, %8, %cst_8 {dimension_numbers = #tpu.dot_dimension_numbers<[1], [0], [0], [1], [0, 0, 1, 1], [], []>} : vector<256x128xf32>, vector<128x128xf32>, vector<256x128xf32> -> vector<256x128xf32>
    %c0_9 = arith.constant 0 : index
    %c0_10 = arith.constant 0 : index
    %10 = vector.load %arg5[%c0_9, %c0_10] : memref<1x128xf32, #tpu.memory_space<vmem>>, vector<1x128xf32>
    %11 = vector.broadcast %10 : vector<1x128xf32> to vector<256x128xf32>
    %12 = arith.addf %9, %11 : vector<256x128xf32>
    %c0_11 = arith.constant 0 : index
    %c0_12 = arith.constant 0 : index
    %13 = vector.load %arg6[%c0_11, %c0_12] : memref<128x128xf32, #tpu.memory_space<vmem>>, vector<128x128xf32>
    %cst_13 = arith.constant dense<0.000000e+00> : vector<256x128xf32>
    %14 = tpu.matmul %12, %13, %cst_13 {dimension_numbers = #tpu.dot_dimension_numbers<[1], [0], [0], [1], [0, 0, 1, 1], [], []>} : vector<256x128xf32>, vector<128x128xf32>, vector<256x128xf32> -> vector<256x128xf32>
    %c0_14 = arith.constant 0 : index
    %c0_15 = arith.constant 0 : index
    %15 = vector.load %arg7[%c0_14, %c0_15] : memref<1x128xf32, #tpu.memory_space<vmem>>, vector<1x128xf32>
    %16 = vector.broadcast %15 : vector<1x128xf32> to vector<256x128xf32>
    %17 = arith.addf %14, %16 : vector<256x128xf32>
    %cst_16 = arith.constant 0.000000e+00 : f32
    %18 = vector.broadcast %cst_16 : f32 to vector<256x128xf32>
    %19 = arith.maximumf %17, %18 : vector<256x128xf32>
    %c0_17 = arith.constant 0 : index
    %c0_18 = arith.constant 0 : index
    %20 = vector.load %arg8[%c0_17, %c0_18] : memref<128x128xf32, #tpu.memory_space<vmem>>, vector<128x128xf32>
    %cst_19 = arith.constant dense<0.000000e+00> : vector<256x128xf32>
    %21 = tpu.matmul %19, %20, %cst_19 {dimension_numbers = #tpu.dot_dimension_numbers<[1], [0], [0], [1], [0, 0, 1, 1], [], []>} : vector<256x128xf32>, vector<128x128xf32>, vector<256x128xf32> -> vector<256x128xf32>
    %c0_20 = arith.constant 0 : index
    %c0_21 = arith.constant 0 : index
    %22 = vector.load %arg9[%c0_20, %c0_21] : memref<1x128xf32, #tpu.memory_space<vmem>>, vector<1x128xf32>
    %23 = vector.broadcast %22 : vector<1x128xf32> to vector<256x128xf32>
    %24 = arith.addf %21, %23 : vector<256x128xf32>
    %25 = arith.addf %12, %24 : vector<256x128xf32>
    %c0_22 = arith.constant 0 : index
    %c0_23 = arith.constant 0 : index
    %26 = vector.load %arg10[%c0_22, %c0_23] : memref<256x128xf32, #tpu.memory_space<vmem>>, vector<256x128xf32>
    tpu.vector_store %arg10[%c0_22, %c0_23], %25 {strides = array<i32>} : memref<256x128xf32, #tpu.memory_space<vmem>>, vector<256x128xf32>,
    return
  }
  func.func @transform_0(%arg0: i32) -> (i32, i32) {
    %c0_i32 = arith.constant 0 : i32
    %c0_i32_0 = arith.constant 0 : i32
    return %arg0, %c0_i32 : i32, i32
  }
  func.func @transform_1(%arg0: i32) -> (i32, i32) {
    %c0_i32 = arith.constant 0 : i32
    %c0_i32_0 = arith.constant 0 : i32
    %c0_i32_1 = arith.constant 0 : i32
    return %c0_i32, %c0_i32_0 : i32, i32
  }
  func.func @transform_2(%arg0: i32) -> (i32, i32) {
    %c0_i32 = arith.constant 0 : i32
    %c0_i32_0 = arith.constant 0 : i32
    %c0_i32_1 = arith.constant 0 : i32
    return %c0_i32, %c0_i32_0 : i32, i32
  }
  func.func @transform_3(%arg0: i32) -> (i32, i32) {
    %c0_i32 = arith.constant 0 : i32
    %c0_i32_0 = arith.constant 0 : i32
    %c0_i32_1 = arith.constant 0 : i32
    return %c0_i32, %c0_i32_0 : i32, i32
  }
  func.func @transform_4(%arg0: i32) -> (i32, i32) {
    %c0_i32 = arith.constant 0 : i32
    %c0_i32_0 = arith.constant 0 : i32
    %c0_i32_1 = arith.constant 0 : i32
    return %c0_i32, %c0_i32_0 : i32, i32
  }
  func.func @transform_5(%arg0: i32) -> (i32, i32) {
    %c0_i32 = arith.constant 0 : i32
    %c0_i32_0 = arith.constant 0 : i32
    %c0_i32_1 = arith.constant 0 : i32
    return %c0_i32, %c0_i32_0 : i32, i32
  }
  func.func @transform_6(%arg0: i32) -> (i32, i32) {
    %c0_i32 = arith.constant 0 : i32
    %c0_i32_0 = arith.constant 0 : i32
    %c0_i32_1 = arith.constant 0 : i32
    return %c0_i32, %c0_i32_0 : i32, i32
  }
  func.func @transform_7(%arg0: i32) -> (i32, i32) {
    %c0_i32 = arith.constant 0 : i32
    %c0_i32_0 = arith.constant 0 : i32
    %c0_i32_1 = arith.constant 0 : i32
    return %c0_i32, %c0_i32_0 : i32, i32
  }
  func.func @transform_8(%arg0: i32) -> (i32, i32) {
    %c0_i32 = arith.constant 0 : i32
    %c0_i32_0 = arith.constant 0 : i32
    %c0_i32_1 = arith.constant 0 : i32
    return %c0_i32, %c0_i32_0 : i32, i32
  }
  func.func @transform_9(%arg0: i32) -> (i32, i32) {
    %c0_i32 = arith.constant 0 : i32
    %c0_i32_0 = arith.constant 0 : i32
    return %arg0, %c0_i32 : i32, i32
  }
}

</mosaic_0001>

<bundles_post_ra>
// kernel: tpu_custom_call.1
= control target key start
LH: loop header
LB: loop body
LE: loop exit
PB: predicated region body
PF: predicated region fallthrough
CT: control target
= control target key end

     0   :  { %14 = vsyncpa [#allocation3], 0  ;;  %s2513_s0 = inlined_call_operand.vmem [shape: f32[256,34], index: 0, kind: input, shape index: {}]   ;;  %s2514_s1 = inlined_call_operand.vmem [shape: f32[34,128], index: 1, kind: input, shape index: {}]   ;;  %s2515_s2 = inlined_call_operand.vmem [shape: f32[1,128], index: 2, kind: input, shape index: {}]   ;;  %s2516_s3 = inlined_call_operand.vmem [shape: f32[128,128], index: 3, kind: input, shape index: {}]   ;;  %s2517_s4 = inlined_call_operand.vmem [shape: f32[1,128], index: 4, kind: input, shape index: {}]   ;;  %s2518_s5 = inlined_call_operand.vmem [shape: f32[128,128], index: 5, kind: input, shape index: {}]   ;;  %s2519_s6 = inlined_call_operand.vmem [shape: f32[1,128], index: 6, kind: input, shape index: {}]   ;;  %s2520_s7 = inlined_call_operand.hbm [shape: f32[128,128], index: 7, kind: input, shape index: {}]   ;;  %s2521_s8 = inlined_call_operand.vmem [shape: f32[1,128], index: 8, kind: input, shape index: {}]   ;;  %s2522_s9 = inlined_call_operand.hbm [shape: f32[256,128], index: 9, kind: output, shape index: {}]  }
   0x1   :  { %15 = vsyncpa [#allocation4], 0  ;;  %s1902_s30 = smov [#allocation2]  }
   0x2   :  { %s35_s10 = sshll.u32 %s1902_s30, 4  ;;  %s36_s10 = int_to_ptr.vmem [resolvable:$true] %s35_s10 }
   0x3   :  { %s1866_s11 = scalar_lea.vmem %s36_s10, 2048  ;;  %p1871_p1 = scmp.lt.s32.totalorder %s36_s10, %s36_s10 }
   0x4   :  { %p1867_p0 = scmp.ne.s32.totalorder %s36_s10, %s1866_s11  ;;  %p1872_p2 = scmp.lt.s32.totalorder %s1866_s11, %s1866_s11 }
   0x6   :  { %p1873_p3 = por %p1872_p2, %p1871_p1 }
   0x8   :  { %p1874_p4 = pnand %p1873_p3, %p1867_p0 }
   0xa   :  { %1877 = shalt.err (!%p1874_p4)
}
   0xb   :  { %s1903_s12 = smov 128   ;;  %s1904_s13 = smov 8  }
   0xc   :  { %41 = dma.hbm_to_vmem [thread:$0]  %s2520_s7, 2048, %s36_s10, [#allocation3], %s1903_s12, %s1903_s12, %s1904_s13  }
   0xd   :  { %1898 = dma.done.wait [#allocation3], 2048  }
   0xe   :  { %1899 = vsyncadd [#allocation3], 4294965248  ;;  %vm188_vm0 = vcmask 1041408   ;;  %vm91_vm1 = vcmask 277504   ;;  %v83_v0 = vld [vmem:[%s2514_s1 + $0x20] sm:$0x3] }
   0xf   :  { %v82_v1 = vld [vmem:[%s2514_s1 + $0x18] sm:$0xff]  ;;  %1524 = vmatprep.subr.msk.mxu0 %vm188_vm0, %v83_v0  ;;  %v47_v2 = vld [vmem:[%s2513_s0] sm:$0xff]  ;;  %v81_v3 = vld [vmem:[%s2514_s1 + $0x10] sm:$0xff] }
  0x10   :  { %1525 = vmatpush3.msk.msra.mxu0 %vm188_vm0, %v83_v0  ;;  %1534 = vmatprep.mubr.msk.f32.mxu0 %vm91_vm1, %v47_v2  ;;  %v80_v4 = vld [vmem:[%s2514_s1 + $0x8] sm:$0xff]  ;;  %v79_v5 = vld [vmem:[%s2514_s1] sm:$0xff]  ;;  %v49_v7 = vld [vmem:[%s2513_s0 + $0x10] sm:$0xff] }
  0x11   :  { %1526 = vmatprep.subr.mxu0 %v82_v1  ;;  %v48_v6 = vld [vmem:[%s2513_s0 + $0x8] sm:$0xff]  ;;  %v50_v8 = vld [vmem:[%s2513_s0 + $0x18] sm:$0xff]  ;;  %v463_v10 = vld [vmem:[%s2516_s3 + $0x70] sm:$0xff] }
  0x12   :  { %1527 = vmatpush3.msra.mxu0 %v82_v1  ;;  %v464_v9 = vld [vmem:[%s2516_s3 + $0x78] sm:$0xff]  ;;  %v51_v11 = vld [vmem:[%s2513_s0 + $0x20] sm:$0xff]  ;;  %v462_v12 = vld [vmem:[%s2516_s3 + $0x68] sm:$0xff] }
  0x13   :  { %1528 = vmatprep.subr.mxu0 %v81_v3  ;;  %1582 = vmatprep.subr.mxu1 %v464_v9  ;;  %v52_v13 = vld [vmem:[%s2513_s0 + $0x28] sm:$0xff]  ;;  %v461_v14 = vld [vmem:[%s2516_s3 + $0x60] sm:$0xff]  ;;  %v53_v15 = vld [vmem:[%s2513_s0 + $0x30] sm:$0xff] }
  0x14   :  { %1529 = vmatpush3.msra.mxu0 %v81_v3  ;;  %1583 = vmatpush3.msra.mxu1 %v464_v9  ;;  %v460_v16 = vld [vmem:[%s2516_s3 + $0x58] sm:$0xff]  ;;  %v459_v18 = vld [vmem:[%s2516_s3 + $0x50] sm:$0xff]  ;;  %v55_v19 = vld [vmem:[%s2513_s0 + $0x40] sm:$0xff] }
  0x15   :  { %1530 = vmatprep.subr.mxu0 %v80_v4  ;;  %1584 = vmatprep.subr.mxu1 %v463_v10  ;;  %v54_v17 = vld [vmem:[%s2513_s0 + $0x38] sm:$0xff]  ;;  %v458_v20 = vld [vmem:[%s2516_s3 + $0x48] sm:$0xff]  ;;  %v457_v22 = vld [vmem:[%s2516_s3 + $0x40] sm:$0xff] }
  0x16   :  { %1531 = vmatpush3.msra.mxu0 %v80_v4  ;;  %1585 = vmatpush3.msra.mxu1 %v463_v10  ;;  %v56_v21 = vld [vmem:[%s2513_s0 + $0x48] sm:$0xff]  ;;  %v57_v23 = vld [vmem:[%s2513_s0 + $0x50] sm:$0xff]  ;;  %v456_v24 = vld [vmem:[%s2516_s3 + $0x38] sm:$0xff] }
  0x17   :  { %1532 = vmatprep.subr.mxu0 %v79_v5  ;;  %1586 = vmatprep.subr.mxu1 %v462_v12  ;;  %v58_v25 = vld [vmem:[%s2513_s0 + $0x58] sm:$0xff]  ;;  %v455_v26 = vld [vmem:[%s2516_s3 + $0x30] sm:$0xff]  ;;  %v59_v27 = vld [vmem:[%s2513_s0 + $0x60] sm:$0xff] }
  0x18   :  { %1533 = vmatpush3.msra.mxu0 %v79_v5  ;;  %1587 = vmatpush3.msra.mxu1 %v462_v12  ;;  %v454_v28 = vld [vmem:[%s2516_s3 + $0x28] sm:$0xff]  ;;  %v453_v30 = vld [vmem:[%s2516_s3 + $0x20] sm:$0xff]  ;;  %v61_v31 = vld [vmem:[%s2513_s0 + $0x70] sm:$0xff] }
  0x19   :  { %1535 = vmatmul.mubr.msk.f32.vlgmr.msra.gmra.mxu0 %vm91_vm1, %v48_v6  ;;  %1588 = vmatprep.subr.mxu1 %v461_v14  ;;  %v60_v29 = vld [vmem:[%s2513_s0 + $0x68] sm:$0xff]  ;;  %v62_v32 = vld [vmem:[%s2513_s0 + $0x78] sm:$0xff]  ;;  %v63_v33 = vld [vmem:[%s2513_s0 + $0x80] sm:$0xff] }
  0x1a   :  { %1537 = vmatprep.mubr.msk.f32.mxu0 %vm91_vm1, %v49_v7  ;;  %1589 = vmatpush3.msra.mxu1 %v461_v14  ;;  %v64_v34 = vld [vmem:[%s2513_s0 + $0x88] sm:$0xff]  ;;  %v65_v35 = vld [vmem:[%s2513_s0 + $0x90] sm:$0xff]  ;;  %v66_v36 = vld [vmem:[%s2513_s0 + $0x98] sm:$0xff] }
  0x1b   :  { %1590 = vmatprep.subr.mxu1 %v460_v16  ;;  %v67_v37 = vld [vmem:[%s2513_s0 + $0xa0] sm:$0xff]  ;;  %v68_v38 = vld [vmem:[%s2513_s0 + $0xa8] sm:$0xff]  ;;  %v69_v39 = vld [vmem:[%s2513_s0 + $0xb0] sm:$0xff] }
  0x1c   :  { %1591 = vmatpush3.msra.mxu1 %v460_v16  ;;  %v70_v40 = vld [vmem:[%s2513_s0 + $0xb8] sm:$0xff]  ;;  %v71_v41 = vld [vmem:[%s2513_s0 + $0xc0] sm:$0xff]  ;;  %v72_v42 = vld [vmem:[%s2513_s0 + $0xc8] sm:$0xff] }
  0x1d   :  { %1538 = vmatmul.mubr.msk.f32.gmra.mxu0 %vm91_vm1, %v50_v8  ;;  %1592 = vmatprep.subr.mxu1 %v459_v18  ;;  %v73_v43 = vld [vmem:[%s2513_s0 + $0xd0] sm:$0xff]  ;;  %v74_v44 = vld [vmem:[%s2513_s0 + $0xd8] sm:$0xff]  ;;  %v75_v45 = vld [vmem:[%s2513_s0 + $0xe0] sm:$0xff] }
  0x1e   :  { %1540 = vmatprep.mubr.msk.f32.mxu0 %vm91_vm1, %v51_v11  ;;  %1593 = vmatpush3.msra.mxu1 %v459_v18  ;;  %v76_v46 = vld [vmem:[%s2513_s0 + $0xe8] sm:$0xff]  ;;  %v77_v47 = vld [vmem:[%s2513_s0 + $0xf0] sm:$0xff]  ;;  %v78_v48 = vld [vmem:[%s2513_s0 + $0xf8] sm:$0xff] }
  0x1f   :  { %1594 = vmatprep.subr.mxu1 %v458_v20  ;;  %v452_v49 = vld [vmem:[%s2516_s3 + $0x18] sm:$0xff]  ;;  %v451_v50 = vld [vmem:[%s2516_s3 + $0x10] sm:$0xff]  ;;  %v450_v51 = vld [vmem:[%s2516_s3 + $0x8] sm:$0xff] }
  0x20   :  { %1595 = vmatpush3.msra.mxu1 %v458_v20  ;;  %v449_v52 = vld [vmem:[%s2516_s3] sm:$0xff]  ;;  %v712_v53 = vld [vmem:[%s2518_s5 + $0x78] sm:$0xff]  ;;  %v711_v54 = vld [vmem:[%s2518_s5 + $0x70] sm:$0xff] }
  0x21   :  { %1541 = vmatmul.mubr.msk.f32.gmra.mxu0 %vm91_vm1, %v52_v13  ;;  %1596 = vmatprep.subr.mxu1 %v457_v22  ;;  %v710_v55 = vld [vmem:[%s2518_s5 + $0x68] sm:$0xff]  ;;  %v709_v56 = vld [vmem:[%s2518_s5 + $0x60] sm:$0xff]  ;;  %v708_v57 = vld [vmem:[%s2518_s5 + $0x58] sm:$0xff] }
  0x22   :  { %1543 = vmatprep.mubr.msk.f32.mxu0 %vm91_vm1, %v53_v15  ;;  %1597 = vmatpush3.msra.mxu1 %v457_v22  ;;  %v707_v58 = vld [vmem:[%s2518_s5 + $0x50] sm:$0xff]  ;;  %v706_v59 = vld [vmem:[%s2518_s5 + $0x48] sm:$0xff]  ;;  %v705_v60 = vld [vmem:[%s2518_s5 + $0x40] sm:$0xff] }
  0x23   :  { %1598 = vmatprep.subr.mxu1 %v456_v24  ;;  %1662 = vmatprep.subr.mxu0 %v712_v53  ;;  %v704_v61 = vld [vmem:[%s2518_s5 + $0x38] sm:$0xff]  ;;  %v703_v62 = vld [vmem:[%s2518_s5 + $0x30] sm:$0xff]  ;;  %v702_v63 = vld [vmem:[%s2518_s5 + $0x28] sm:$0xff] }
  0x24   :  { %1599 = vmatpush3.msra.mxu1 %v456_v24  ;;  %1663 = vmatpush3.msra.mxu0 %v712_v53  ;;  %v701_v0 = vld [vmem:[%s2518_s5 + $0x20] sm:$0xff]  ;;  %v700_v1 = vld [vmem:[%s2518_s5 + $0x18] sm:$0xff]  ;;  %v699_v2 = vld [vmem:[%s2518_s5 + $0x10] sm:$0xff] }
  0x25   :  { %1544 = vmatmul.mubr.msk.f32.gmra.mxu0 %vm91_vm1, %v54_v17  ;;  %1600 = vmatprep.subr.mxu1 %v455_v26  ;;  %v698_v3 = vld [vmem:[%s2518_s5 + $0x8] sm:$0xff]  ;;  %v2201_v4 = vld [vmem:[%s2515_s2] ss:$0 sm:$0xff] }
  0x26   :  { %1546 = vmatprep.mubr.msk.f32.mxu0 %vm91_vm1, %v55_v19  ;;  %1601 = vmatpush3.msra.mxu1 %v455_v26 }
  0x27   :  { %1602 = vmatprep.subr.mxu1 %v454_v28  ;;  %1664 = vmatprep.subr.mxu0 %v711_v54 }
  0x28   :  { %1603 = vmatpush3.msra.mxu1 %v454_v28  ;;  %1665 = vmatpush3.msra.mxu0 %v711_v54 }
  0x29   :  { %1547 = vmatmul.mubr.msk.f32.gmra.mxu0 %vm91_vm1, %v56_v21  ;;  %1604 = vmatprep.subr.mxu1 %v453_v30 }
  0x2a   :  { %1549 = vmatprep.mubr.msk.f32.mxu0 %vm91_vm1, %v57_v23  ;;  %1605 = vmatpush3.msra.mxu1 %v453_v30 }
  0x2b   :  { %1606 = vmatprep.subr.mxu1 %v452_v49  ;;  %1666 = vmatprep.subr.mxu0 %v710_v55 }
  0x2c   :  { %1607 = vmatpush3.msra.mxu1 %v452_v49  ;;  %1667 = vmatpush3.msra.mxu0 %v710_v55 }
  0x2d   :  { %1550 = vmatmul.mubr.msk.f32.gmra.mxu0 %vm91_vm1, %v58_v25  ;;  %1608 = vmatprep.subr.mxu1 %v451_v50 }
  0x2e   :  { %1552 = vmatprep.mubr.msk.f32.mxu0 %vm91_vm1, %v59_v27  ;;  %1609 = vmatpush3.msra.mxu1 %v451_v50 }
  0x2f   :  { %1610 = vmatprep.subr.mxu1 %v450_v51  ;;  %1668 = vmatprep.subr.mxu0 %v709_v56 }
  0x30   :  { %1611 = vmatpush3.msra.mxu1 %v450_v51  ;;  %1669 = vmatpush3.msra.mxu0 %v709_v56 }
  0x31   :  { %1553 = vmatmul.mubr.msk.f32.gmra.mxu0 %vm91_vm1, %v60_v29  ;;  %1612 = vmatprep.subr.mxu1 %v449_v52 }
  0x32   :  { %1555 = vmatprep.mubr.msk.f32.mxu0 %vm91_vm1, %v61_v31  ;;  %1613 = vmatpush3.msra.mxu1 %v449_v52 }
  0x33   :  { %1670 = vmatprep.subr.mxu0 %v708_v57 }
  0x34   :  { %1671 = vmatpush3.msra.mxu0 %v708_v57 }
  0x35   :  { %1556 = vmatmul.mubr.msk.f32.gmra.mxu0 %vm91_vm1, %v62_v32  ;;  %1672 = vmatprep.subr.mxu0 %v707_v58 }
  0x36   :  { %1558 = vmatprep.mubr.msk.f32.mxu0 %vm91_vm1, %v63_v33  ;;  %1673 = vmatpush3.msra.mxu0 %v707_v58 }
  0x37   :  { %1674 = vmatprep.subr.mxu0 %v706_v59 }
  0x38   :  { %1675 = vmatpush3.msra.mxu0 %v706_v59 }
  0x39   :  { %1559 = vmatmul.mubr.msk.f32.gmra.mxu0 %vm91_vm1, %v64_v34  ;;  %1676 = vmatprep.subr.mxu0 %v705_v60 }
  0x3a   :  { %1561 = vmatprep.mubr.msk.f32.mxu0 %vm91_vm1, %v65_v35  ;;  %1677 = vmatpush3.msra.mxu0 %v705_v60 }
  0x3b   :  { %1678 = vmatprep.subr.mxu0 %v704_v61 }
  0x3c   :  { %1679 = vmatpush3.msra.mxu0 %v704_v61 }
  0x3d   :  { %1562 = vmatmul.mubr.msk.f32.gmra.mxu0 %vm91_vm1, %v66_v36  ;;  %1680 = vmatprep.subr.mxu0 %v703_v62 }
  0x3e   :  { %1564 = vmatprep.mubr.msk.f32.mxu0 %vm91_vm1, %v67_v37  ;;  %1681 = vmatpush3.msra.mxu0 %v703_v62 }
  0x3f   :  { %1682 = vmatprep.subr.mxu0 %v702_v63 }
  0x40   :  { %1683 = vmatpush3.msra.mxu0 %v702_v63 }
  0x41   :  { %1565 = vmatmul.mubr.msk.f32.gmra.mxu0 %vm91_vm1, %v68_v38  ;;  %1684 = vmatprep.subr.mxu0 %v701_v0 }
  0x42   :  { %1567 = vmatprep.mubr.msk.f32.mxu0 %vm91_vm1, %v69_v39  ;;  %1685 = vmatpush3.msra.mxu0 %v701_v0 }
  0x43   :  { %1686 = vmatprep.subr.mxu0 %v700_v1 }
  0x44   :  { %1687 = vmatpush3.msra.mxu0 %v700_v1 }
  0x45   :  { %1568 = vmatmul.mubr.msk.f32.gmra.mxu0 %vm91_vm1, %v70_v40  ;;  %1688 = vmatprep.subr.mxu0 %v699_v2 }
  0x46   :  { %1570 = vmatprep.mubr.msk.f32.mxu0 %vm91_vm1, %v71_v41  ;;  %1689 = vmatpush3.msra.mxu0 %v699_v2 }
  0x47   :  { %1690 = vmatprep.subr.mxu0 %v698_v3 }
  0x48   :  { %1691 = vmatpush3.msra.mxu0 %v698_v3 }
  0x49   :  { %1571 = vmatmul.mubr.msk.f32.gmra.mxu0 %vm91_vm1, %v72_v42 }
  0x4a   :  { %1573 = vmatprep.mubr.msk.f32.mxu0 %vm91_vm1, %v73_v43 }
  0x4d   :  { %1574 = vmatmul.mubr.msk.f32.gmra.mxu0 %vm91_vm1, %v74_v44 }
  0x4e   :  { %1576 = vmatprep.mubr.msk.f32.mxu0 %vm91_vm1, %v75_v45 }
  0x51   :  { %1577 = vmatmul.mubr.msk.f32.gmra.mxu0 %vm91_vm1, %v76_v46 }
  0x52   :  { %1579 = vmatprep.mubr.msk.f32.mxu0 %vm91_vm1, %v77_v47 }
  0x55   :  { %1580 = vmatmul.mubr.msk.f32.gmra.mxu0 %vm91_vm1, %v78_v48 }
  0xd9   :  { %v1536_v5 = vpop.f32.mrf.mxu0 }
  0xda   :  { %v264_v6 = vadd.f32 %v1536_v5, %v2201_v4 }
  0xdb   :  { %v258_v7 = vpop.f32.mrf.mxu0 }
  0xdc   :  { %v259_v8 = vadd.f32 %v2201_v4, %v258_v7  ;;  %v418_v11 = vmax.f32 %v264_v6, 0.0 }
  0xdd   :  { %v1539_v9 = vpop.f32.mrf.mxu0 }
  0xde   :  { %v417_v10 = vmax.f32 %v259_v8, 0.0  ;;  %v274_v12 = vadd.f32 %v1539_v9, %v2201_v4 }
  0xdf   :  { %v268_v13 = vpop.f32.mrf.mxu0 }
  0xe0   :  { %v269_v14 = vadd.f32 %v2201_v4, %v268_v13  ;;  %1614 = vmatprep.mubr.f32.mxu1 %v417_v10  ;;  %v420_v17 = vmax.f32 %v274_v12, 0.0 }
  0xe1   :  { %v1542_v15 = vpop.f32.mrf.mxu0  ;;  %1615 = vmatmul.mubr.f32.vlgmr.msra.gmra.mxu1 %v418_v11 }
  0xe2   :  { %v419_v16 = vmax.f32 %v269_v14, 0.0  ;;  %v284_v18 = vadd.f32 %v1542_v15, %v2201_v4 }
  0xe3   :  { %v278_v19 = vpop.f32.mrf.mxu0 }
  0xe4   :  { %v279_v20 = vadd.f32 %v2201_v4, %v278_v19  ;;  %1617 = vmatprep.mubr.f32.mxu1 %v419_v16  ;;  %v422_v23 = vmax.f32 %v284_v18, 0.0 }
  0xe5   :  { %v1545_v21 = vpop.f32.mrf.mxu0  ;;  %1618 = vmatmul.mubr.f32.gmra.mxu1 %v420_v17 }
  0xe6   :  { %v421_v22 = vmax.f32 %v279_v20, 0.0  ;;  %v294_v24 = vadd.f32 %v1545_v21, %v2201_v4 }
  0xe7   :  { %v288_v25 = vpop.f32.mrf.mxu0 }
  0xe8   :  { %v289_v26 = vadd.f32 %v2201_v4, %v288_v25  ;;  %1620 = vmatprep.mubr.f32.mxu1 %v421_v22  ;;  %v424_v29 = vmax.f32 %v294_v24, 0.0 }
  0xe9   :  { %v1548_v27 = vpop.f32.mrf.mxu0  ;;  %1621 = vmatmul.mubr.f32.gmra.mxu1 %v422_v23 }
  0xea   :  { %v423_v28 = vmax.f32 %v289_v26, 0.0  ;;  %v304_v30 = vadd.f32 %v1548_v27, %v2201_v4 }
  0xeb   :  { %v298_v31 = vpop.f32.mrf.mxu0 }
  0xec   :  { %v299_v32 = vadd.f32 %v2201_v4, %v298_v31  ;;  %1623 = vmatprep.mubr.f32.mxu1 %v423_v28  ;;  %v426_v35 = vmax.f32 %v304_v30, 0.0 }
  0xed   :  { %v1551_v33 = vpop.f32.mrf.mxu0  ;;  %1624 = vmatmul.mubr.f32.gmra.mxu1 %v424_v29 }
  0xee   :  { %v425_v34 = vmax.f32 %v299_v32, 0.0  ;;  %v314_v36 = vadd.f32 %v1551_v33, %v2201_v4 }
  0xef   :  { %v308_v37 = vpop.f32.mrf.mxu0 }
  0xf0   :  { %v309_v38 = vadd.f32 %v2201_v4, %v308_v37  ;;  %1626 = vmatprep.mubr.f32.mxu1 %v425_v34  ;;  %v428_v41 = vmax.f32 %v314_v36, 0.0 }
  0xf1   :  { %v1554_v39 = vpop.f32.mrf.mxu0  ;;  %1627 = vmatmul.mubr.f32.gmra.mxu1 %v426_v35 }
  0xf2   :  { %v427_v40 = vmax.f32 %v309_v38, 0.0  ;;  %v324_v42 = vadd.f32 %v1554_v39, %v2201_v4  ;;  %v697_v38 = vld [vmem:[%s2518_s5] sm:$0xff]  ;;  %v992_v39 = vld [vmem:[#allocation2 + $0x78] sm:$0xff] }
  0xf3   :  { %v318_v43 = vpop.f32.mrf.mxu0  ;;  %1692 = vmatprep.subr.mxu0 %v697_v38  ;;  %1822 = vmatprep.subr.mxu1 %v992_v39 }
  0xf4   :  { %v319_v44 = vadd.f32 %v2201_v4, %v318_v43  ;;  %1629 = vmatprep.mubr.f32.mxu1 %v427_v40  ;;  %v430_v47 = vmax.f32 %v324_v42, 0.0  ;;  %1693 = vmatpush3.msra.mxu0 %v697_v38  ;;  %v991_v40 = vld [vmem:[#allocation2 + $0x70] sm:$0xff]  ;;  %v988_v42 = vld [vmem:[#allocation2 + $0x58] sm:$0xff] }
  0xf5   :  { %v1557_v45 = vpop.f32.mrf.mxu0  ;;  %1630 = vmatmul.mubr.f32.gmra.mxu1 %v428_v41  ;;  %1742 = vmatprep.subr.mxu0 %v992_v39  ;;  %v989_v41 = vld [vmem:[#allocation2 + $0x60] sm:$0xff]  ;;  %v987_v43 = vld [vmem:[#allocation2 + $0x50] sm:$0xff] }
  0xf6   :  { %v429_v46 = vmax.f32 %v319_v44, 0.0  ;;  %v334_v48 = vadd.f32 %v1557_v45, %v2201_v4  ;;  %1838 = vmatpush3.msra.mxu1 %v992_v39  ;;  %v986_v44 = vld [vmem:[#allocation2 + $0x48] sm:$0xff]  ;;  %v985_v45 = vld [vmem:[#allocation2 + $0x40] sm:$0xff] }
  0xf7   :  { %v328_v49 = vpop.f32.mrf.mxu0  ;;  %1823 = vmatprep.subr.mxu1 %v991_v40 }
  0xf8   :  { %v329_v50 = vadd.f32 %v2201_v4, %v328_v49  ;;  %1632 = vmatprep.mubr.f32.mxu1 %v429_v46  ;;  %v432_v53 = vmax.f32 %v334_v48, 0.0  ;;  %1839 = vmatpush3.msra.mxu1 %v991_v40  ;;  %v2238_v46 = vld [vmem:[#allocation2 + $0x38] sm:$0xff]  ;;  %v2246_v48 = vld [vmem:[#allocation2 + $0x28] sm:$0xff]  ;;  %v2250_v49 = vld [vmem:[#allocation2 + $0x20] sm:$0xff] }
  0xf9   :  { %v1560_v51 = vpop.f32.mrf.mxu0  ;;  %1633 = vmatmul.mubr.f32.gmra.mxu1 %v430_v47  ;;  %v2242_v47 = vld [vmem:[#allocation2 + $0x30] sm:$0xff] }
  0xfa   :  { %v431_v52 = vmax.f32 %v329_v50, 0.0  ;;  %v344_v54 = vadd.f32 %v1560_v51, %v2201_v4  ;;  %v2254_v50 = vld [vmem:[#allocation2 + $0x18] sm:$0xff] }
  0xfb   :  { %v338_v55 = vpop.f32.mrf.mxu0 }
  0xfc   :  { %v339_v56 = vadd.f32 %v2201_v4, %v338_v55  ;;  %1635 = vmatprep.mubr.f32.mxu1 %v431_v52  ;;  %v434_v59 = vmax.f32 %v344_v54, 0.0  ;;  %v2261_v52 = vld [vmem:[%s2517_s4] ss:$0 sm:$0xff] }
  0xfd   :  { %v1563_v57 = vpop.f32.mrf.mxu0  ;;  %1636 = vmatmul.mubr.f32.gmra.mxu1 %v432_v53 }
  0xfe   :  { %v433_v58 = vmax.f32 %v339_v56, 0.0  ;;  %v354_v60 = vadd.f32 %v1563_v57, %v2201_v4 }
  0xff   :  { %v348_v61 = vpop.f32.mrf.mxu0 }
 0x100   :  { %v349_v62 = vadd.f32 %v2201_v4, %v348_v61  ;;  %1638 = vmatprep.mubr.f32.mxu1 %v433_v58  ;;  %v436_v1 = vmax.f32 %v354_v60, 0.0 }
 0x101   :  { %v1566_v63 = vpop.f32.mrf.mxu0  ;;  %1639 = vmatmul.mubr.f32.gmra.mxu1 %v434_v59 }
 0x102   :  { %v435_v0 = vmax.f32 %v349_v62, 0.0  ;;  %v364_v2 = vadd.f32 %v1566_v63, %v2201_v4 }
 0x103   :  { %v358_v3 = vpop.f32.mrf.mxu0 }
 0x104   :  { %v359_v5 = vadd.f32 %v2201_v4, %v358_v3  ;;  %1641 = vmatprep.mubr.f32.mxu1 %v435_v0  ;;  %v438_v8 = vmax.f32 %v364_v2, 0.0 }
 0x105   :  { %v1569_v6 = vpop.f32.mrf.mxu0  ;;  %1642 = vmatmul.mubr.f32.gmra.mxu1 %v436_v1 }
 0x106   :  { %v437_v7 = vmax.f32 %v359_v5, 0.0  ;;  %v374_v9 = vadd.f32 %v1569_v6, %v2201_v4 }
 0x107   :  { %v368_v10 = vpop.f32.mrf.mxu0 }
 0x108   :  { %v369_v11 = vadd.f32 %v2201_v4, %v368_v10  ;;  %1644 = vmatprep.mubr.f32.mxu1 %v437_v7  ;;  %v440_v14 = vmax.f32 %v374_v9, 0.0 }
 0x109   :  { %v1572_v12 = vpop.f32.mrf.mxu0  ;;  %1645 = vmatmul.mubr.f32.gmra.mxu1 %v438_v8 }
 0x10a   :  { %v439_v13 = vmax.f32 %v369_v11, 0.0  ;;  %v384_v15 = vadd.f32 %v1572_v12, %v2201_v4 }
 0x10b   :  { %v378_v16 = vpop.f32.mrf.mxu0 }
 0x10c   :  { %v379_v17 = vadd.f32 %v2201_v4, %v378_v16  ;;  %1647 = vmatprep.mubr.f32.mxu1 %v439_v13  ;;  %v442_v20 = vmax.f32 %v384_v15, 0.0 }
 0x10d   :  { %v1575_v18 = vpop.f32.mrf.mxu0  ;;  %1648 = vmatmul.mubr.f32.gmra.mxu1 %v440_v14 }
 0x10e   :  { %v441_v19 = vmax.f32 %v379_v17, 0.0  ;;  %v394_v21 = vadd.f32 %v1575_v18, %v2201_v4 }
 0x10f   :  { %v388_v22 = vpop.f32.mrf.mxu0 }
 0x110   :  { %v389_v23 = vadd.f32 %v2201_v4, %v388_v22  ;;  %1650 = vmatprep.mubr.f32.mxu1 %v441_v19  ;;  %v444_v26 = vmax.f32 %v394_v21, 0.0 }
 0x111   :  { %v1578_v24 = vpop.f32.mrf.mxu0  ;;  %1651 = vmatmul.mubr.f32.gmra.mxu1 %v442_v20 }
 0x112   :  { %v443_v25 = vmax.f32 %v389_v23, 0.0  ;;  %v404_v27 = vadd.f32 %v1578_v24, %v2201_v4 }
 0x113   :  { %v398_v28 = vpop.f32.mrf.mxu0 }
 0x114   :  { %v399_v29 = vadd.f32 %v2201_v4, %v398_v28  ;;  %1653 = vmatprep.mubr.f32.mxu1 %v443_v25  ;;  %v446_v32 = vmax.f32 %v404_v27, 0.0 }
 0x115   :  { %v1581_v30 = vpop.f32.mrf.mxu0  ;;  %1654 = vmatmul.mubr.f32.gmra.mxu1 %v444_v26 }
 0x116   :  { %v445_v31 = vmax.f32 %v399_v29, 0.0  ;;  %v414_v33 = vadd.f32 %v1581_v30, %v2201_v4 }
 0x117   :  { %v408_v34 = vpop.f32.mrf.mxu0 }
 0x118   :  { %v409_v35 = vadd.f32 %v2201_v4, %v408_v34  ;;  %1656 = vmatprep.mubr.f32.mxu1 %v445_v31  ;;  %v448_v37 = vmax.f32 %v414_v33, 0.0  ;;  %v990_v4 = vld [vmem:[#allocation2 + $0x68] sm:$0xff] }
 0x119   :  { %1657 = vmatmul.mubr.f32.gmra.mxu1 %v446_v32  ;;  %1824 = vmatprep.subr.mxu1 %v990_v4 }
 0x11a   :  { %v447_v36 = vmax.f32 %v409_v35, 0.0  ;;  %1840 = vmatpush3.msra.mxu1 %v990_v4 }
 0x11b   :  { %1825 = vmatprep.subr.mxu1 %v989_v41 }
 0x11c   :  { %1659 = vmatprep.mubr.f32.mxu1 %v447_v36  ;;  %1841 = vmatpush3.msra.mxu1 %v989_v41 }
 0x11d   :  { %1660 = vmatmul.mubr.f32.gmra.mxu1 %v448_v37  ;;  %1826 = vmatprep.subr.mxu1 %v988_v42 }
 0x11e   :  { %1842 = vmatpush3.msra.mxu1 %v988_v42 }
 0x11f   :  { %1827 = vmatprep.subr.mxu1 %v987_v43 }
 0x120   :  { %1843 = vmatpush3.msra.mxu1 %v987_v43 }
 0x121   :  { %1828 = vmatprep.subr.mxu1 %v986_v44 }
 0x122   :  { %1844 = vmatpush3.msra.mxu1 %v986_v44 }
 0x123   :  { %1829 = vmatprep.subr.mxu1 %v985_v45 }
 0x124   :  { %1845 = vmatpush3.msra.mxu1 %v985_v45 }
 0x125   :  { %1830 = vmatprep.subr.mxu1 %v2238_v46 }
 0x126   :  { %1846 = vmatpush3.msra.mxu1 %v2238_v46 }
 0x127   :  { %1831 = vmatprep.subr.mxu1 %v2242_v47 }
 0x128   :  { %1847 = vmatpush3.msra.mxu1 %v2242_v47 }
 0x129   :  { %1832 = vmatprep.subr.mxu1 %v2246_v48 }
 0x12a   :  { %1848 = vmatpush3.msra.mxu1 %v2246_v48 }
 0x12b   :  { %1833 = vmatprep.subr.mxu1 %v2250_v49 }
 0x12c   :  { %1849 = vmatpush3.msra.mxu1 %v2250_v49 }
 0x12d   :  { %1834 = vmatprep.subr.mxu1 %v2254_v50 }
 0x12e   :  { %1850 = vmatpush3.msra.mxu1 %v2254_v50 }
 0x1a1   :  { %v1616_v51 = vpop.f32.mrf.mxu1 }
 0x1a2   :  { %v2267_v55 = vadd.f32 %v1616_v51, %v2261_v52 }
 0x1a3   :  { %v538_v53 = vpop.f32.mrf.mxu1 }
 0x1a4   :  { %v2264_v54 = vadd.f32 %v2261_v52, %v538_v53  ;;  %v979_v53 = vld [vmem:[#allocation2 + $0x10] sm:$0xff] }
 0x1a5   :  { %v1619_v56 = vpop.f32.mrf.mxu1  ;;  %1835 = vmatprep.subr.mxu1 %v979_v53 }
 0x1a6   :  { %1694 = vmatprep.mubr.f32.mxu0 %v2264_v54  ;;  %v2275_v59 = vadd.f32 %v1619_v56, %v2261_v52  ;;  %1851 = vmatpush3.msra.mxu1 %v979_v53  ;;  %v978_v56 = vld [vmem:[#allocation2 + $0x8] sm:$0xff] }
 0x1a7   :  { %v548_v57 = vpop.f32.mrf.mxu1  ;;  %1695 = vmatmul.mubr.f32.vlgmr.msra.gmra.mxu0 %v2267_v55  ;;  %1836 = vmatprep.subr.mxu1 %v978_v56 }
 0x1a8   :  { %v2272_v58 = vadd.f32 %v2261_v52, %v548_v57  ;;  %1743 = vmatpush3.msra.mxu0 %v992_v39  ;;  %v977_v57 = vld [vmem:[#allocation2] sm:$0xff]  ;;  %1852 = vmatpush3.msra.mxu1 %v978_v56 }
 0x1a9   :  { %v1622_v60 = vpop.f32.mrf.mxu1  ;;  %1744 = vmatprep.subr.mxu0 %v991_v40  ;;  %1837 = vmatprep.subr.mxu1 %v977_v57 }
 0x1aa   :  { %1697 = vmatprep.mubr.f32.mxu0 %v2272_v58  ;;  %1745 = vmatpush3.msra.mxu0 %v991_v40  ;;  %v2283_v63 = vadd.f32 %v1622_v60, %v2261_v52 }
 0x1ab   :  { %v558_v61 = vpop.f32.mrf.mxu1  ;;  %1698 = vmatmul.mubr.f32.gmra.mxu0 %v2275_v59  ;;  %1746 = vmatprep.subr.mxu0 %v990_v4 }
 0x1ac   :  { %v2280_v62 = vadd.f32 %v2261_v52, %v558_v61  ;;  %1747 = vmatpush3.msra.mxu0 %v990_v4  ;;  %1853 = vmatpush3.msra.mxu1 %v977_v57 }
 0x1ad   :  { %v1625_v0 = vpop.f32.mrf.mxu1  ;;  %1748 = vmatprep.subr.mxu0 %v989_v41 }
 0x1ae   :  { %1700 = vmatprep.mubr.f32.mxu0 %v2280_v62  ;;  %1749 = vmatpush3.msra.mxu0 %v989_v41  ;;  %v2291_v3 = vadd.f32 %v1625_v0, %v2261_v52 }
 0x1af   :  { %v568_v1 = vpop.f32.mrf.mxu1  ;;  %1701 = vmatmul.mubr.f32.gmra.mxu0 %v2283_v63  ;;  %1750 = vmatprep.subr.mxu0 %v988_v42 }
 0x1b0   :  { %v2288_v2 = vadd.f32 %v2261_v52, %v568_v1  ;;  %1751 = vmatpush3.msra.mxu0 %v988_v42 }
 0x1b1   :  { %v1628_v5 = vpop.f32.mrf.mxu1  ;;  %1752 = vmatprep.subr.mxu0 %v987_v43 }
 0x1b2   :  { %1703 = vmatprep.mubr.f32.mxu0 %v2288_v2  ;;  %1753 = vmatpush3.msra.mxu0 %v987_v43  ;;  %v2299_v8 = vadd.f32 %v1628_v5, %v2261_v52 }
 0x1b3   :  { %v578_v6 = vpop.f32.mrf.mxu1  ;;  %1704 = vmatmul.mubr.f32.gmra.mxu0 %v2291_v3  ;;  %1754 = vmatprep.subr.mxu0 %v986_v44 }
 0x1b4   :  { %v2296_v7 = vadd.f32 %v2261_v52, %v578_v6  ;;  %1755 = vmatpush3.msra.mxu0 %v986_v44 }
 0x1b5   :  { %v1631_v9 = vpop.f32.mrf.mxu1  ;;  %1756 = vmatprep.subr.mxu0 %v985_v45 }
 0x1b6   :  { %1706 = vmatprep.mubr.f32.mxu0 %v2296_v7  ;;  %1757 = vmatpush3.msra.mxu0 %v985_v45  ;;  %v2309_v12 = vadd.f32 %v1631_v9, %v2261_v52 }
 0x1b7   :  { %v588_v10 = vpop.f32.mrf.mxu1  ;;  %1707 = vmatmul.mubr.f32.gmra.mxu0 %v2299_v8  ;;  %1758 = vmatprep.subr.mxu0 %v2238_v46 }
 0x1b8   :  { %v2305_v11 = vadd.f32 %v2261_v52, %v588_v10  ;;  %1759 = vmatpush3.msra.mxu0 %v2238_v46 }
 0x1b9   :  { %v1634_v13 = vpop.f32.mrf.mxu1  ;;  %1760 = vmatprep.subr.mxu0 %v2242_v47 }
 0x1ba   :  { %1709 = vmatprep.mubr.f32.mxu0 %v2305_v11  ;;  %1761 = vmatpush3.msra.mxu0 %v2242_v47  ;;  %v2321_v16 = vadd.f32 %v1634_v13, %v2261_v52 }
 0x1bb   :  { %v598_v14 = vpop.f32.mrf.mxu1  ;;  %1710 = vmatmul.mubr.f32.gmra.mxu0 %v2309_v12  ;;  %1762 = vmatprep.subr.mxu0 %v2246_v48 }
 0x1bc   :  { %v2317_v15 = vadd.f32 %v2261_v52, %v598_v14  ;;  %1763 = vmatpush3.msra.mxu0 %v2246_v48 }
 0x1bd   :  { %v1637_v17 = vpop.f32.mrf.mxu1  ;;  %1764 = vmatprep.subr.mxu0 %v2250_v49 }
 0x1be   :  { %1712 = vmatprep.mubr.f32.mxu0 %v2317_v15  ;;  %1765 = vmatpush3.msra.mxu0 %v2250_v49  ;;  %v2333_v20 = vadd.f32 %v1637_v17, %v2261_v52 }
 0x1bf   :  { %v608_v18 = vpop.f32.mrf.mxu1  ;;  %1713 = vmatmul.mubr.f32.gmra.mxu0 %v2321_v16  ;;  %1766 = vmatprep.subr.mxu0 %v2254_v50 }
 0x1c0   :  { %v2329_v19 = vadd.f32 %v2261_v52, %v608_v18  ;;  %1767 = vmatpush3.msra.mxu0 %v2254_v50 }
 0x1c1   :  { %v1640_v21 = vpop.f32.mrf.mxu1  ;;  %1768 = vmatprep.subr.mxu0 %v979_v53 }
 0x1c2   :  { %1715 = vmatprep.mubr.f32.mxu0 %v2329_v19  ;;  %v2341_v24 = vadd.f32 %v1640_v21, %v2261_v52  ;;  %1769 = vmatpush3.msra.mxu0 %v979_v53 }
 0x1c3   :  { %v618_v22 = vpop.f32.mrf.mxu1  ;;  %1716 = vmatmul.mubr.f32.gmra.mxu0 %v2333_v20  ;;  %1770 = vmatprep.subr.mxu0 %v978_v56 }
 0x1c4   :  { %v2338_v23 = vadd.f32 %v2261_v52, %v618_v22  ;;  %1771 = vmatpush3.msra.mxu0 %v978_v56 }
 0x1c5   :  { %v1643_v25 = vpop.f32.mrf.mxu1  ;;  %1772 = vmatprep.subr.mxu0 %v977_v57 }
 0x1c6   :  { %1718 = vmatprep.mubr.f32.mxu0 %v2338_v23  ;;  %v2349_v28 = vadd.f32 %v1643_v25, %v2261_v52  ;;  %1773 = vmatpush3.msra.mxu0 %v977_v57 }
 0x1c7   :  { %v628_v26 = vpop.f32.mrf.mxu1  ;;  %1719 = vmatmul.mubr.f32.gmra.mxu0 %v2341_v24 }
 0x1c8   :  { %v2346_v27 = vadd.f32 %v2261_v52, %v628_v26 }
 0x1c9   :  { %v1646_v29 = vpop.f32.mrf.mxu1 }
 0x1ca   :  { %1721 = vmatprep.mubr.f32.mxu0 %v2346_v27  ;;  %v2357_v32 = vadd.f32 %v1646_v29, %v2261_v52 }
 0x1cb   :  { %v638_v30 = vpop.f32.mrf.mxu1  ;;  %1722 = vmatmul.mubr.f32.gmra.mxu0 %v2349_v28 }
 0x1cc   :  { %v2354_v31 = vadd.f32 %v2261_v52, %v638_v30 }
 0x1cd   :  { %v1649_v33 = vpop.f32.mrf.mxu1 }
 0x1ce   :  { %1724 = vmatprep.mubr.f32.mxu0 %v2354_v31  ;;  %v2365_v36 = vadd.f32 %v1649_v33, %v2261_v52 }
 0x1cf   :  { %v648_v34 = vpop.f32.mrf.mxu1  ;;  %1725 = vmatmul.mubr.f32.gmra.mxu0 %v2357_v32 }
 0x1d0   :  { %v2362_v35 = vadd.f32 %v2261_v52, %v648_v34 }
 0x1d1   :  { %v1652_v37 = vpop.f32.mrf.mxu1 }
 0x1d2   :  { %1727 = vmatprep.mubr.f32.mxu0 %v2362_v35  ;;  %v2373_v40 = vadd.f32 %v1652_v37, %v2261_v52 }
 0x1d3   :  { %v658_v38 = vpop.f32.mrf.mxu1  ;;  %1728 = vmatmul.mubr.f32.gmra.mxu0 %v2365_v36 }
 0x1d4   :  { %v2370_v39 = vadd.f32 %v2261_v52, %v658_v38 }
 0x1d5   :  { %v1655_v4 = vpop.f32.mrf.mxu1 }
 0x1d6   :  { %1730 = vmatprep.mubr.f32.mxu0 %v2370_v39  ;;  %v2381_v43 = vadd.f32 %v1655_v4, %v2261_v52 }
 0x1d7   :  { %v668_v41 = vpop.f32.mrf.mxu1  ;;  %1731 = vmatmul.mubr.f32.gmra.mxu0 %v2373_v40 }
 0x1d8   :  { %v2378_v42 = vadd.f32 %v2261_v52, %v668_v41 }
 0x1d9   :  { %v1658_v44 = vpop.f32.mrf.mxu1 }
 0x1da   :  { %1733 = vmatprep.mubr.f32.mxu0 %v2378_v42  ;;  %v2389_v47 = vadd.f32 %v1658_v44, %v2261_v52 }
 0x1db   :  { %v678_v45 = vpop.f32.mrf.mxu1  ;;  %1734 = vmatmul.mubr.f32.gmra.mxu0 %v2381_v43 }
 0x1dc   :  { %v2386_v46 = vadd.f32 %v2261_v52, %v678_v45 }
 0x1dd   :  { %v1661_v48 = vpop.f32.mrf.mxu1 }
 0x1de   :  { %1736 = vmatprep.mubr.f32.mxu0 %v2386_v46  ;;  %v2397_v51 = vadd.f32 %v1661_v48, %v2261_v52 }
 0x1df   :  { %v688_v49 = vpop.f32.mrf.mxu1  ;;  %1737 = vmatmul.mubr.f32.gmra.mxu0 %v2389_v47 }
 0x1e0   :  { %v2394_v50 = vadd.f32 %v2261_v52, %v688_v49  ;;  %v2404_v52 = vld [vmem:[%s2519_s6] ss:$0 sm:$0xff] }
 0x1e2   :  { %1739 = vmatprep.mubr.f32.mxu0 %v2394_v50 }
 0x1e3   :  { %1740 = vmatmul.mubr.f32.gmra.mxu0 %v2397_v51 }
 0x267   :  { %v1696_v60 = vpop.f32.mrf.mxu0 }
 0x268   :  { %v792_v61 = vadd.f32 %v1696_v60, %v2404_v52 }
 0x269   :  { %v786_v0 = vpop.f32.mrf.mxu0 }
 0x26a   :  { %v787_v1 = vadd.f32 %v2404_v52, %v786_v0  ;;  %v946_v9 = vmax.f32 %v792_v61, 0.0 }
 0x26b   :  { %v1699_v5 = vpop.f32.mrf.mxu0 }
 0x26c   :  { %v945_v6 = vmax.f32 %v787_v1, 0.0  ;;  %v802_v10 = vadd.f32 %v1699_v5, %v2404_v52 }
 0x26d   :  { %v796_v13 = vpop.f32.mrf.mxu0 }
 0x26e   :  { %v797_v14 = vadd.f32 %v2404_v52, %v796_v13  ;;  %1774 = vmatprep.mubr.f32.mxu0 %v945_v6  ;;  %v948_v21 = vmax.f32 %v802_v10, 0.0 }
 0x26f   :  { %v1702_v17 = vpop.f32.mrf.mxu0  ;;  %1775 = vmatmul.mubr.f32.vlgmr.msra.gmra.mxu0 %v946_v9 }
 0x270   :  { %v947_v18 = vmax.f32 %v797_v14, 0.0  ;;  %v812_v22 = vadd.f32 %v1702_v17, %v2404_v52 }
 0x271   :  { %v806_v25 = vpop.f32.mrf.mxu0 }
 0x272   :  { %v807_v26 = vadd.f32 %v2404_v52, %v806_v25  ;;  %1777 = vmatprep.mubr.f32.mxu0 %v947_v18  ;;  %v950_v33 = vmax.f32 %v812_v22, 0.0 }
 0x273   :  { %v1705_v29 = vpop.f32.mrf.mxu0  ;;  %1778 = vmatmul.mubr.f32.gmra.mxu0 %v948_v21 }
 0x274   :  { %v949_v30 = vmax.f32 %v807_v26, 0.0  ;;  %v822_v34 = vadd.f32 %v1705_v29, %v2404_v52 }
 0x275   :  { %v816_v37 = vpop.f32.mrf.mxu0 }
 0x276   :  { %v817_v38 = vadd.f32 %v2404_v52, %v816_v37  ;;  %1780 = vmatprep.mubr.f32.mxu1 %v949_v30  ;;  %v952_v44 = vmax.f32 %v822_v34, 0.0 }
 0x277   :  { %v1708_v4 = vpop.f32.mrf.mxu0  ;;  %1781 = vmatmul.mubr.f32.vlgmr.msra.gmra.mxu1 %v950_v33 }
 0x278   :  { %v951_v41 = vmax.f32 %v817_v38, 0.0  ;;  %v832_v45 = vadd.f32 %v1708_v4, %v2404_v52 }
 0x279   :  { %v826_v48 = vpop.f32.mrf.mxu0 }
 0x27a   :  { %v827_v49 = vadd.f32 %v2404_v52, %v826_v48  ;;  %1783 = vmatprep.mubr.f32.mxu1 %v951_v41  ;;  %v954_v57 = vmax.f32 %v832_v45, 0.0 }
 0x27b   :  { %v1711_v53 = vpop.f32.mrf.mxu0  ;;  %1784 = vmatmul.mubr.f32.gmra.mxu1 %v952_v44 }
 0x27c   :  { %v953_v56 = vmax.f32 %v827_v49, 0.0  ;;  %v842_v60 = vadd.f32 %v1711_v53, %v2404_v52 }
 0x27d   :  { %v836_v61 = vpop.f32.mrf.mxu0 }
 0x27e   :  { %v837_v0 = vadd.f32 %v2404_v52, %v836_v61  ;;  %1786 = vmatprep.mubr.f32.mxu1 %v953_v56  ;;  %v956_v6 = vmax.f32 %v842_v60, 0.0 }
 0x27f   :  { %v1714_v1 = vpop.f32.mrf.mxu0  ;;  %1787 = vmatmul.mubr.f32.gmra.mxu1 %v954_v57 }
 0x280   :  { %v955_v5 = vmax.f32 %v837_v0, 0.0  ;;  %v852_v9 = vadd.f32 %v1714_v1, %v2404_v52 }
 0x281   :  { %v846_v10 = vpop.f32.mrf.mxu0 }
 0x282   :  { %v847_v13 = vadd.f32 %v2404_v52, %v846_v10  ;;  %1789 = vmatprep.mubr.f32.mxu1 %v955_v5  ;;  %v958_v18 = vmax.f32 %v852_v9, 0.0 }
 0x283   :  { %v1717_v14 = vpop.f32.mrf.mxu0  ;;  %1790 = vmatmul.mubr.f32.gmra.mxu1 %v956_v6 }
 0x284   :  { %v957_v17 = vmax.f32 %v847_v13, 0.0  ;;  %v862_v21 = vadd.f32 %v1717_v14, %v2404_v52 }
 0x285   :  { %v856_v22 = vpop.f32.mrf.mxu0 }
 0x286   :  { %v857_v25 = vadd.f32 %v2404_v52, %v856_v22  ;;  %1792 = vmatprep.mubr.f32.mxu1 %v957_v17  ;;  %v960_v30 = vmax.f32 %v862_v21, 0.0 }
 0x287   :  { %v1720_v26 = vpop.f32.mrf.mxu0  ;;  %1793 = vmatmul.mubr.f32.gmra.mxu1 %v958_v18 }
 0x288   :  { %v959_v29 = vmax.f32 %v857_v25, 0.0  ;;  %v872_v33 = vadd.f32 %v1720_v26, %v2404_v52 }
 0x289   :  { %v866_v34 = vpop.f32.mrf.mxu0 }
 0x28a   :  { %v867_v37 = vadd.f32 %v2404_v52, %v866_v34  ;;  %1795 = vmatprep.mubr.f32.mxu1 %v959_v29  ;;  %v962_v41 = vmax.f32 %v872_v33, 0.0 }
 0x28b   :  { %v1723_v38 = vpop.f32.mrf.mxu0  ;;  %1796 = vmatmul.mubr.f32.gmra.mxu1 %v960_v30 }
 0x28c   :  { %v961_v4 = vmax.f32 %v867_v37, 0.0  ;;  %v882_v44 = vadd.f32 %v1723_v38, %v2404_v52 }
 0x28d   :  { %v876_v45 = vpop.f32.mrf.mxu0 }
 0x28e   :  { %v877_v48 = vadd.f32 %v2404_v52, %v876_v45  ;;  %1798 = vmatprep.mubr.f32.mxu1 %v961_v4  ;;  %v964_v56 = vmax.f32 %v882_v44, 0.0 }
 0x28f   :  { %v1726_v49 = vpop.f32.mrf.mxu0  ;;  %1799 = vmatmul.mubr.f32.gmra.mxu1 %v962_v41 }
 0x290   :  { %v963_v53 = vmax.f32 %v877_v48, 0.0  ;;  %v892_v57 = vadd.f32 %v1726_v49, %v2404_v52 }
 0x291   :  { %v886_v60 = vpop.f32.mrf.mxu0 }
 0x292   :  { %v887_v61 = vadd.f32 %v2404_v52, %v886_v60  ;;  %1801 = vmatprep.mubr.f32.mxu1 %v963_v53  ;;  %v966_v5 = vmax.f32 %v892_v57, 0.0 }
 0x293   :  { %v1729_v0 = vpop.f32.mrf.mxu0  ;;  %1802 = vmatmul.mubr.f32.gmra.mxu1 %v964_v56 }
 0x294   :  { %v965_v1 = vmax.f32 %v887_v61, 0.0  ;;  %v902_v6 = vadd.f32 %v1729_v0, %v2404_v52 }
 0x295   :  { %v896_v9 = vpop.f32.mrf.mxu0 }
 0x296   :  { %v897_v10 = vadd.f32 %v2404_v52, %v896_v9  ;;  %1804 = vmatprep.mubr.f32.mxu1 %v965_v1  ;;  %v968_v17 = vmax.f32 %v902_v6, 0.0  ;;  %v2441_v1 = vld [vmem:[%s2521_s8] ss:$0 sm:$0xff]  ;;  %s1905_s8 = smov [#allocation5]  }
 0x297   :  { %v1732_v13 = vpop.f32.mrf.mxu0  ;;  %1805 = vmatmul.mubr.f32.gmra.mxu1 %v966_v5  ;;  %s1294_s27 = sshll.u32 %s1905_s8, 4  ;;  %s1295_s27 = int_to_ptr.vmem [resolvable:$true] %s1294_s27 }
 0x298   :  { %v967_v14 = vmax.f32 %v897_v10, 0.0  ;;  %v912_v18 = vadd.f32 %v1732_v13, %v2404_v52  ;;  %s1878_s28 = scalar_lea.vmem %s1295_s27, 4096  ;;  %p1883_p6 = scmp.lt.s32.totalorder %s1295_s27, %s1295_s27 }
 0x299   :  { %v906_v21 = vpop.f32.mrf.mxu0  ;;  %p1879_p5 = scmp.ne.s32.totalorder %s1295_s27, %s1878_s28  ;;  %p1884_p7 = scmp.lt.s32.totalorder %s1878_s28, %s1878_s28 }
 0x29a   :  { %v907_v22 = vadd.f32 %v2404_v52, %v906_v21  ;;  %1807 = vmatprep.mubr.f32.mxu1 %v967_v14  ;;  %v970_v29 = vmax.f32 %v912_v18, 0.0 }
 0x29b   :  { %v1735_v25 = vpop.f32.mrf.mxu0  ;;  %1808 = vmatmul.mubr.f32.gmra.mxu1 %v968_v17  ;;  %p1885_p8 = por %p1884_p7, %p1883_p6 }
 0x29c   :  { %v969_v26 = vmax.f32 %v907_v22, 0.0  ;;  %v922_v30 = vadd.f32 %v1735_v25, %v2404_v52 }
 0x29d   :  { %v916_v33 = vpop.f32.mrf.mxu0  ;;  %p1886_p9 = pnand %p1885_p8, %p1879_p5 }
 0x29e   :  { %v917_v34 = vadd.f32 %v2404_v52, %v916_v33  ;;  %1810 = vmatprep.mubr.f32.mxu1 %v969_v26  ;;  %v972_v4 = vmax.f32 %v922_v30, 0.0 }
 0x29f   :  { %v1738_v37 = vpop.f32.mrf.mxu0  ;;  %1811 = vmatmul.mubr.f32.gmra.mxu1 %v970_v29 }
 0x2a0   :  { %v971_v38 = vmax.f32 %v917_v34, 0.0  ;;  %v932_v41 = vadd.f32 %v1738_v37, %v2404_v52 }
 0x2a1   :  { %v926_v44 = vpop.f32.mrf.mxu0 }
 0x2a2   :  { %v927_v45 = vadd.f32 %v2404_v52, %v926_v44  ;;  %1813 = vmatprep.mubr.f32.mxu1 %v971_v38  ;;  %v974_v53 = vmax.f32 %v932_v41, 0.0 }
 0x2a3   :  { %v1741_v48 = vpop.f32.mrf.mxu0  ;;  %1814 = vmatmul.mubr.f32.gmra.mxu1 %v972_v4 }
 0x2a4   :  { %v973_v49 = vmax.f32 %v927_v45, 0.0  ;;  %v942_v56 = vadd.f32 %v1741_v48, %v2404_v52 }
 0x2a5   :  { %v936_v57 = vpop.f32.mrf.mxu0 }
 0x2a6   :  { %v937_v60 = vadd.f32 %v2404_v52, %v936_v57  ;;  %1816 = vmatprep.mubr.f32.mxu1 %v973_v49  ;;  %v976_v0 = vmax.f32 %v942_v56, 0.0 }
 0x2a7   :  { %1817 = vmatmul.mubr.f32.gmra.mxu1 %v974_v53 }
 0x2a8   :  { %v975_v61 = vmax.f32 %v937_v60, 0.0 }
 0x2aa   :  { %1819 = vmatprep.mubr.f32.mxu1 %v975_v61 }
 0x2ab   :  { %1820 = vmatmul.mubr.f32.gmra.mxu1 %v976_v0 }
 0x32f   :  { %v1776_v5 = vpop.f32.mrf.mxu0 }
 0x330   :  { %v1072_v6 = vadd.f32 %v1776_v5, %v2441_v1 }
 0x331   :  { %v1066_v9 = vpop.f32.mrf.mxu0 }
 0x332   :  { %v1226_v10 = vadd.f32 %v1072_v6, %v2267_v55  ;;  %v1067_v13 = vadd.f32 %v2441_v1, %v1066_v9 }
 0x333   :  { %v1779_v52 = vpop.f32.mrf.mxu0 }
 0x334   :  { %1258 = vst [vmem:[#allocation5 + $0x8] sm:$0xff] %v1226_v10  ;;  %v1225_v14 = vadd.f32 %v1067_v13, %v2264_v54  ;;  %v1082_v17 = vadd.f32 %v1779_v52, %v2441_v1 }
 0x335   :  { %v1076_v18 = vpop.f32.mrf.mxu0 }
 0x336   :  { %1257 = vst [vmem:[#allocation5] sm:$0xff] %v1225_v14  ;;  %v1228_v21 = vadd.f32 %v1082_v17, %v2275_v59  ;;  %v1077_v22 = vadd.f32 %v2441_v1, %v1076_v18 }
 0x337   :  { %v1782_v25 = vpop.f32.mrf.mxu1 }
 0x338   :  { %1260 = vst [vmem:[#allocation5 + $0x18] sm:$0xff] %v1228_v21  ;;  %v1227_v26 = vadd.f32 %v1077_v22, %v2272_v58  ;;  %v1092_v55 = vadd.f32 %v1782_v25, %v2441_v1 }
 0x339   :  { %v1086_v29 = vpop.f32.mrf.mxu1 }
 0x33a   :  { %1259 = vst [vmem:[#allocation5 + $0x10] sm:$0xff] %v1227_v26  ;;  %v1230_v30 = vadd.f32 %v1092_v55, %v2283_v63  ;;  %v1087_v54 = vadd.f32 %v2441_v1, %v1086_v29 }
 0x33b   :  { %v1785_v33 = vpop.f32.mrf.mxu1 }
 0x33c   :  { %1262 = vst [vmem:[#allocation5 + $0x28] sm:$0xff] %v1230_v30  ;;  %v1229_v34 = vadd.f32 %v1087_v54, %v2280_v62  ;;  %v1102_v59 = vadd.f32 %v1785_v33, %v2441_v1 }
 0x33d   :  { %v1096_v37 = vpop.f32.mrf.mxu1 }
 0x33e   :  { %1261 = vst [vmem:[#allocation5 + $0x20] sm:$0xff] %v1229_v34  ;;  %v1232_v38 = vadd.f32 %v1102_v59, %v2291_v3  ;;  %v1097_v58 = vadd.f32 %v2441_v1, %v1096_v37 }
 0x33f   :  { %v1788_v4 = vpop.f32.mrf.mxu1 }
 0x340   :  { %1264 = vst [vmem:[#allocation5 + $0x38] sm:$0xff] %v1232_v38  ;;  %v1231_v41 = vadd.f32 %v1097_v58, %v2288_v2  ;;  %v1112_v63 = vadd.f32 %v1788_v4, %v2441_v1 }
 0x341   :  { %v1106_v44 = vpop.f32.mrf.mxu1 }
 0x342   :  { %1263 = vst [vmem:[#allocation5 + $0x30] sm:$0xff] %v1231_v41  ;;  %v1234_v45 = vadd.f32 %v1112_v63, %v2299_v8  ;;  %v1107_v62 = vadd.f32 %v2441_v1, %v1106_v44 }
 0x343   :  { %v1791_v48 = vpop.f32.mrf.mxu1 }
 0x344   :  { %1266 = vst [vmem:[#allocation5 + $0x48] sm:$0xff] %v1234_v45  ;;  %v1233_v49 = vadd.f32 %v1107_v62, %v2296_v7  ;;  %v1122_v3 = vadd.f32 %v1791_v48, %v2441_v1 }
 0x345   :  { %v1116_v53 = vpop.f32.mrf.mxu1 }
 0x346   :  { %1265 = vst [vmem:[#allocation5 + $0x40] sm:$0xff] %v1233_v49  ;;  %v1236_v56 = vadd.f32 %v1122_v3, %v2309_v12  ;;  %v1117_v2 = vadd.f32 %v2441_v1, %v1116_v53 }
 0x347   :  { %v1794_v57 = vpop.f32.mrf.mxu1 }
 0x348   :  { %1268 = vst [vmem:[#allocation5 + $0x58] sm:$0xff] %v1236_v56  ;;  %v1235_v60 = vadd.f32 %v1117_v2, %v2305_v11  ;;  %v1132_v8 = vadd.f32 %v1794_v57, %v2441_v1 }
 0x349   :  { %v1126_v61 = vpop.f32.mrf.mxu1 }
 0x34a   :  { %1267 = vst [vmem:[#allocation5 + $0x50] sm:$0xff] %v1235_v60  ;;  %v1238_v0 = vadd.f32 %v1132_v8, %v2321_v16  ;;  %v1127_v7 = vadd.f32 %v2441_v1, %v1126_v61 }
 0x34b   :  { %v1797_v5 = vpop.f32.mrf.mxu1 }
 0x34c   :  { %1270 = vst [vmem:[#allocation5 + $0x68] sm:$0xff] %v1238_v0  ;;  %v1237_v6 = vadd.f32 %v1127_v7, %v2317_v15  ;;  %v1142_v12 = vadd.f32 %v1797_v5, %v2441_v1 }
 0x34d   :  { %v1136_v9 = vpop.f32.mrf.mxu1 }
 0x34e   :  { %1269 = vst [vmem:[#allocation5 + $0x60] sm:$0xff] %v1237_v6  ;;  %v1240_v10 = vadd.f32 %v1142_v12, %v2333_v20  ;;  %v1137_v11 = vadd.f32 %v2441_v1, %v1136_v9 }
 0x34f   :  { %v1800_v13 = vpop.f32.mrf.mxu1 }
 0x350   :  { %1272 = vst [vmem:[#allocation5 + $0x78] sm:$0xff] %v1240_v10  ;;  %v1239_v52 = vadd.f32 %v1137_v11, %v2329_v19  ;;  %v1152_v16 = vadd.f32 %v1800_v13, %v2441_v1 }
 0x351   :  { %v1146_v14 = vpop.f32.mrf.mxu1 }
 0x352   :  { %1271 = vst [vmem:[#allocation5 + $0x70] sm:$0xff] %v1239_v52  ;;  %v1242_v17 = vadd.f32 %v1152_v16, %v2341_v24  ;;  %v1147_v15 = vadd.f32 %v2441_v1, %v1146_v14 }
 0x353   :  { %v1803_v18 = vpop.f32.mrf.mxu1 }
 0x354   :  { %1274 = vst [vmem:[#allocation5 + $0x88] sm:$0xff] %v1242_v17  ;;  %v1241_v21 = vadd.f32 %v1147_v15, %v2338_v23  ;;  %v1162_v20 = vadd.f32 %v1803_v18, %v2441_v1 }
 0x355   :  { %v1156_v22 = vpop.f32.mrf.mxu1 }
 0x356   :  { %1273 = vst [vmem:[#allocation5 + $0x80] sm:$0xff] %v1241_v21  ;;  %v1244_v25 = vadd.f32 %v1162_v20, %v2349_v28  ;;  %v1157_v19 = vadd.f32 %v2441_v1, %v1156_v22 }
 0x357   :  { %v1806_v26 = vpop.f32.mrf.mxu1 }
 0x358   :  { %1276 = vst [vmem:[#allocation5 + $0x98] sm:$0xff] %v1244_v25  ;;  %v1243_v55 = vadd.f32 %v1157_v19, %v2346_v27  ;;  %v1172_v24 = vadd.f32 %v1806_v26, %v2441_v1 }
 0x359   :  { %v1166_v29 = vpop.f32.mrf.mxu1 }
 0x35a   :  { %1275 = vst [vmem:[#allocation5 + $0x90] sm:$0xff] %v1243_v55  ;;  %v1246_v30 = vadd.f32 %v1172_v24, %v2357_v32  ;;  %v1167_v23 = vadd.f32 %v2441_v1, %v1166_v29 }
 0x35b   :  { %v1809_v54 = vpop.f32.mrf.mxu1 }
 0x35c   :  { %1278 = vst [vmem:[#allocation5 + $0xa8] sm:$0xff] %v1246_v30  ;;  %v1245_v33 = vadd.f32 %v1167_v23, %v2354_v31  ;;  %v1182_v28 = vadd.f32 %v1809_v54, %v2441_v1 }
 0x35d   :  { %v1176_v34 = vpop.f32.mrf.mxu1 }
 0x35e   :  { %1277 = vst [vmem:[#allocation5 + $0xa0] sm:$0xff] %v1245_v33  ;;  %v1248_v59 = vadd.f32 %v1182_v28, %v2365_v36  ;;  %v1177_v27 = vadd.f32 %v2441_v1, %v1176_v34 }
 0x35f   :  { %v1812_v37 = vpop.f32.mrf.mxu1 }
 0x360   :  { %1280 = vst [vmem:[#allocation5 + $0xb8] sm:$0xff] %v1248_v59  ;;  %v1247_v38 = vadd.f32 %v1177_v27, %v2362_v35  ;;  %v1192_v32 = vadd.f32 %v1812_v37, %v2441_v1 }
 0x361   :  { %v1186_v58 = vpop.f32.mrf.mxu1 }
 0x362   :  { %1279 = vst [vmem:[#allocation5 + $0xb0] sm:$0xff] %v1247_v38  ;;  %v1250_v4 = vadd.f32 %v1192_v32, %v2373_v40  ;;  %v1187_v31 = vadd.f32 %v2441_v1, %v1186_v58 }
 0x363   :  { %v1815_v41 = vpop.f32.mrf.mxu1 }
 0x364   :  { %1282 = vst [vmem:[#allocation5 + $0xc8] sm:$0xff] %v1250_v4  ;;  %v1249_v63 = vadd.f32 %v1187_v31, %v2370_v39  ;;  %v1202_v36 = vadd.f32 %v1815_v41, %v2441_v1 }
 0x365   :  { %v1196_v44 = vpop.f32.mrf.mxu1 }
 0x366   :  { %1281 = vst [vmem:[#allocation5 + $0xc0] sm:$0xff] %v1249_v63  ;;  %v1252_v45 = vadd.f32 %v1202_v36, %v2381_v43  ;;  %v1197_v35 = vadd.f32 %v2441_v1, %v1196_v44 }
 0x367   :  { %v1818_v62 = vpop.f32.mrf.mxu1 }
 0x368   :  { %1284 = vst [vmem:[#allocation5 + $0xd8] sm:$0xff] %v1252_v45  ;;  %v1251_v48 = vadd.f32 %v1197_v35, %v2378_v42  ;;  %v1212_v40 = vadd.f32 %v1818_v62, %v2441_v1 }
 0x369   :  { %v1206_v49 = vpop.f32.mrf.mxu1 }
 0x36a   :  { %1283 = vst [vmem:[#allocation5 + $0xd0] sm:$0xff] %v1251_v48  ;;  %v1254_v3 = vadd.f32 %v1212_v40, %v2389_v47  ;;  %v1207_v39 = vadd.f32 %v2441_v1, %v1206_v49 }
 0x36b   :  { %v1821_v53 = vpop.f32.mrf.mxu1 }
 0x36c   :  { %1286 = vst [vmem:[#allocation5 + $0xe8] sm:$0xff] %v1254_v3  ;;  %v1253_v56 = vadd.f32 %v1207_v39, %v2386_v46  ;;  %v1222_v43 = vadd.f32 %v1821_v53, %v2441_v1 }
 0x36d   :  { %v1216_v2 = vpop.f32.mrf.mxu1 }
 0x36e   :  { %1285 = vst [vmem:[#allocation5 + $0xe0] sm:$0xff] %v1253_v56  ;;  %v1256_v42 = vadd.f32 %v1222_v43, %v2397_v51  ;;  %v1217_v57 = vadd.f32 %v2441_v1, %v1216_v2 }
 0x370   :  { %1288 = vst [vmem:[#allocation5 + $0xf8] sm:$0xff] %v1256_v42  ;;  %v1255_v60 = vadd.f32 %v1217_v57, %v2394_v50 }
 0x372   :  { %1287 = vst [vmem:[#allocation5 + $0xf0] sm:$0xff] %v1255_v60 }
 0x373   :  { %1889 = shalt.err (!%p1886_p9)
}
 0x374   :  { %1300 = dma.vmem_to_hbm [thread:$0]  %s1295_s27, 4096, %s2522_s9, [#allocation4], %s1903_s12, %s1903_s12, %s1904_s13  }
 0x375   :  { %1900 = dma.done.wait [#allocation4], 4096  }
 0x376   :  { %1901 = vsyncadd [#allocation4], 4294963200 }
 0x377   :  { %1304 = vsyncpa [#allocation3], 1 }
 0x378   :  { %1305 = vsyncpa [#allocation4], 1 }

</bundles_post_ra>
